<compile_context>
chip_gen: v5e
topology: v5e:2x2
jax: 0.10.0
libtpu: 0.0.40
codegen_flags: <defaults>
</compile_context>

<pallas_src>
import functools

import jax
import jax.numpy as jnp
from jax import lax
from jax.experimental import pallas as pl
from jax.experimental.pallas import tpu as pltpu


def _make_dice_kernel(l_true: int, needs_mask: bool):
    """l_true: valid extent of the folded lane axis L; needs_mask: last block ragged."""

    def kernel(x_ref, t_ref, inter_ref, union_ref):
        h = pl.program_id(1)

        # Zero the resident per-(n, c) accumulators at the first lane tile.
        @pl.when(h == 0)
        def _():
            inter_ref[...] = jnp.zeros_like(inter_ref)
            union_ref[...] = jnp.zeros_like(union_ref)

        x = x_ref[0].astype(jnp.float32)        # (C, S, BL), cast in VMEM
        ti = t_ref[0].astype(jnp.int32)         # (S, BL), labels (narrow dtypes OK)
        C, S, BL = x.shape

        # Softmax over the class axis.  C is a leading (non-tiled) axis, so
        # these reductions are element-wise combines of dense (S, BL) planes.
        m = jnp.max(x, axis=0, keepdims=True)               # (1, S, BL)
        e = jnp.exp(x - m)                                   # (C, S, BL)
        denom = jnp.sum(e, axis=0, keepdims=True)            # (1, S, BL)
        # One exact reciprocal per pixel, then cheap VPU multiplies.
        p = e * pl.reciprocal(denom, approx=False)           # (C, S, BL)

        if needs_mask:
            lane = lax.broadcasted_iota(jnp.int32, (S, BL), 1)
            valid = (h * BL + lane) < l_true                 # (S, BL)
        else:
            valid = None

        def _rsum(v):  # (S, BL) -> (1, 1): lane reduce, then sublane reduce
            return jnp.sum(jnp.sum(v, axis=1, keepdims=True),
                           axis=0, keepdims=True)

        # One-hot via C unrolled scalar compares (no tile-sized iota); per-class
        # partial intersection / union accumulated into the resident output.
        for c in range(C):
            p_c = p[c]                                        # (S, BL)
            match_c = ti == c
            if valid is not None:
                match_c = jnp.logical_and(match_c, valid)
                p_c = jnp.where(valid, p_c, 0.0)
            oh_c = match_c.astype(jnp.float32)
            inter_ref[0, c] += _rsum(jnp.where(match_c, p_c, 0.0))
            union_ref[0, c] += _rsum(p_c + oh_c)

    return kernel


@functools.partial(jax.jit,
                   static_argnames=("smooth", "block_bytes", "block_l"))
def simple_dice_loss(inputs, targets, smooth=1e-6,
                     block_bytes=4 * 1024 * 1024, block_l=None):
    """inputs: (N, C, H, W) float (any dtype); targets: (N, H, W) int labels."""
    N, C, H, W = inputs.shape
    HW = H * W

    # Fold HW into (S, L): S = largest divisor of HW <= 8 so per-class planes
    # fill vreg sublanes densely.  The reshape is contiguous (free) and no
    # padding pass over HBM is ever issued.
    S = 1
    for s in (8, 7, 6, 5, 4, 3, 2):
        if HW % s == 0:
            S = s
            break
    L = HW // S

    # Lane-tile size: ~block_bytes per input block (double-buffered by the
    # pipeline), multiple of 128, or the full L when L is smaller.
    if block_l is None:
        itemsize = jnp.dtype(inputs.dtype).itemsize
        block_l = max(128,
                      (block_bytes // max(1, C * S * itemsize)) // 128 * 128)
    if block_l >= L:
        block_l = L
    else:
        block_l = max(128, (block_l // 128) * 128)
    num_l = pl.cdiv(L, block_l)
    needs_mask = (L % block_l) != 0

    # Keep original dtypes in HBM: no f32 upcast, no pad, no target astype.
    x = inputs.reshape(N, C, S, L)
    t = targets.reshape(N, S, L)

    kernel = _make_dice_kernel(L, needs_mask)

    inter, union = pl.pallas_call(
        kernel,
        out_shape=(
            jax.ShapeDtypeStruct((N, C, 1, 1), jnp.float32),
            jax.ShapeDtypeStruct((N, C, 1, 1), jnp.float32),
        ),
        grid_spec=pltpu.PrefetchScalarGridSpec(
            num_scalar_prefetch=0,
            grid=(N, num_l),
            in_specs=[
                pl.BlockSpec((1, C, S, block_l), lambda n, h: (n, 0, 0, h)),
                pl.BlockSpec((1, S, block_l), lambda n, h: (n, 0, h)),
            ],
            out_specs=[
                pl.BlockSpec((1, C, 1, 1), lambda n, h: (n, 0, 0, 0)),
                pl.BlockSpec((1, C, 1, 1), lambda n, h: (n, 0, 0, 0)),
            ],
        ),
        compiler_params=pltpu.CompilerParams(
            dimension_semantics=("parallel", "arbitrary"),
            vmem_limit_bytes=32 * 1024 * 1024,
        ),
    )(x, t)

    inter = inter[:, :, 0, 0]                                 # (N, C)
    union = union[:, :, 0, 0]                                 # (N, C)
    dice = (2.0 * inter + smooth) / (union + smooth)
    return 1.0 - jnp.mean(dice)


def _reference_dice_loss(inputs, targets, smooth=1e-6):
    # Pure-JAX reference mirroring the PyTorch module (computed in f32).
    p = jax.nn.softmax(inputs.astype(jnp.float32), axis=1)
    C = inputs.shape[1]
    oh = jax.nn.one_hot(targets.astype(jnp.int32), C, axis=1, dtype=jnp.float32)
    inter = jnp.sum(p * oh, axis=(2, 3))
    union = jnp.sum(p, axis=(2, 3)) + jnp.sum(oh, axis=(2, 3))
    dice = (2.0 * inter + smooth) / (union + smooth)
    return 1.0 - jnp.mean(dice)


if __name__ == "__main__":
    key = jax.random.PRNGKey(0)

    # Case 1: suggested small shape (2, 4, 16, 16): HW=256 -> S=8, L=32,
    # single (full-L) lane tile, no masking.
    k1, k2 = jax.random.split(key)
    inputs = jax.random.normal(k1, (2, 4, 16, 16), dtype=jnp.float32)
    targets = jax.random.randint(k2, (2, 16, 16), 0, 4, dtype=jnp.int32)
    loss = jax.block_until_ready(simple_dice_loss(inputs, targets))
    ref = _reference_dice_loss(inputs, targets)
    assert jnp.allclose(loss, ref, atol=1e-5, rtol=1e-5), (loss, ref)

    # Case 2: HW=1440 -> S=8, L=180; force block_l=128 so both the multi-tile
    # accumulation path and the ragged last-block lane mask are exercised.
    k3, k4 = jax.random.split(k2)
    inputs2 = jax.random.normal(k3, (2, 4, 40, 36), dtype=jnp.float32)
    targets2 = jax.random.randint(k4, (2, 40, 36), 0, 4, dtype=jnp.int32)
    loss2 = jax.block_until_ready(simple_dice_loss(inputs2, targets2, block_l=128))
    ref2 = _reference_dice_loss(inputs2, targets2)
    assert jnp.allclose(loss2, ref2, atol=1e-5, rtol=1e-5), (loss2, ref2)

    # Case 3: HW=100 (not divisible by 8) -> S=5 fallback fold, C=3.
    k5, k6 = jax.random.split(k4)
    inputs3 = jax.random.normal(k5, (2, 3, 10, 10), dtype=jnp.float32)
    targets3 = jax.random.randint(k6, (2, 10, 10), 0, 3, dtype=jnp.int32)
    loss3 = jax.block_until_ready(simple_dice_loss(inputs3, targets3))
    ref3 = _reference_dice_loss(inputs3, targets3)
    assert jnp.allclose(loss3, ref3, atol=1e-5, rtol=1e-5), (loss3, ref3)

    print("KERNEL_OK")
</pallas_src>

<mosaic_0001>
module attributes {stable_mosaic.version = 11 : i64} {
  func.func @kernel(%arg0: i32, %arg1: i32, %arg2: memref<1x4x8x32xf32, #tpu.memory_space<vmem>>, %arg3: memref<1x8x32xi32, #tpu.memory_space<vmem>>, %arg4: memref<1x4x1x1xf32, #tpu.memory_space<vmem>>, %arg5: memref<1x4x1x1xf32, #tpu.memory_space<vmem>>) attributes {dimension_semantics = [#tpu.dimension_semantics<parallel>, #tpu.dimension_semantics<arbitrary>], iteration_bounds = array<i64: 2, 1>, scalar_prefetch = 0 : i64, scratch_operands = 0 : i64, tpu.core_type = #tpu.core_type<tc>, window_params = [{transform_indices = @transform_0, window_bounds = array<i64: 1, 4, 8, 32>}, {transform_indices = @transform_1, window_bounds = array<i64: 1, 8, 32>}, {transform_indices = @transform_2, window_bounds = array<i64: 1, 4, 1, 1>}, {transform_indices = @transform_3, window_bounds = array<i64: 1, 4, 1, 1>}]} {
    %c0_i32 = arith.constant 0 : i32
    %0 = arith.cmpi eq, %arg1, %c0_i32 : i32
    %1 = arith.extui %0 : i1 to i32
    %c0_i32_0 = arith.constant 0 : i32
    %2 = arith.cmpi ne, %1, %c0_i32_0 : i32
    scf.if %2 {
      %cst_90 = arith.constant 0.000000e+00 : f32
      %133 = vector.broadcast %cst_90 : f32 to vector<1x4x1x1xf32>
      %c0_91 = arith.constant 0 : index
      %c0_92 = arith.constant 0 : index
      %c0_93 = arith.constant 0 : index
      %c0_94 = arith.constant 0 : index
      %134 = vector.load %arg4[%c0_91, %c0_92, %c0_93, %c0_94] : memref<1x4x1x1xf32, #tpu.memory_space<vmem>>, vector<1x4x1x1xf32>
      tpu.vector_store %arg4[%c0_91, %c0_92, %c0_93, %c0_94], %133 {strides = array<i32>} : memref<1x4x1x1xf32, #tpu.memory_space<vmem>>, vector<1x4x1x1xf32>,
      %cst_95 = arith.constant 0.000000e+00 : f32
      %135 = vector.broadcast %cst_95 : f32 to vector<1x4x1x1xf32>
      %c0_96 = arith.constant 0 : index
      %c0_97 = arith.constant 0 : index
      %c0_98 = arith.constant 0 : index
      %c0_99 = arith.constant 0 : index
      %136 = vector.load %arg5[%c0_96, %c0_97, %c0_98, %c0_99] : memref<1x4x1x1xf32, #tpu.memory_space<vmem>>, vector<1x4x1x1xf32>
      tpu.vector_store %arg5[%c0_96, %c0_97, %c0_98, %c0_99], %135 {strides = array<i32>} : memref<1x4x1x1xf32, #tpu.memory_space<vmem>>, vector<1x4x1x1xf32>,
    } else {
    }
    %c0 = arith.constant 0 : index
    %c0_1 = arith.constant 0 : index
    %c0_2 = arith.constant 0 : index
    %c0_3 = arith.constant 0 : index
    %3 = vector.load %arg2[%c0, %c0_1, %c0_2, %c0_3] : memref<1x4x8x32xf32, #tpu.memory_space<vmem>>, vector<1x4x8x32xf32>
    %4 = vector.shape_cast %3 : vector<1x4x8x32xf32> to vector<4x8x32xf32>
    %c0_4 = arith.constant 0 : index
    %c0_5 = arith.constant 0 : index
    %c0_6 = arith.constant 0 : index
    %5 = vector.load %arg3[%c0_4, %c0_5, %c0_6] : memref<1x8x32xi32, #tpu.memory_space<vmem>>, vector<1x8x32xi32>
    %6 = vector.shape_cast %5 : vector<1x8x32xi32> to vector<8x32xi32>
    %cst = arith.constant dense<0xFF800000> : vector<8x32xf32>
    %7 = vector.multi_reduction <maximumf>, %4, %cst [0] : vector<4x8x32xf32> to vector<8x32xf32>
    %8 = vector.shape_cast %7 : vector<8x32xf32> to vector<1x8x32xf32>
    %9 = vector.broadcast %8 : vector<1x8x32xf32> to vector<4x8x32xf32>
    %10 = arith.subf %4, %9 : vector<4x8x32xf32>
    %11 = math.exp %10 : vector<4x8x32xf32>
    %cst_7 = arith.constant dense<0.000000e+00> : vector<8x32xf32>
    %12 = vector.multi_reduction <add>, %11, %cst_7 [0] : vector<4x8x32xf32> to vector<8x32xf32>
    %13 = vector.shape_cast %12 : vector<8x32xf32> to vector<1x8x32xf32>
    %14 = tpu.reciprocal %13 : vector<1x8x32xf32> -> vector<1x8x32xf32>
    %15 = vector.broadcast %14 : vector<1x8x32xf32> to vector<4x8x32xf32>
    %16 = arith.mulf %11, %15 : vector<4x8x32xf32>
    %17 = vector.extract_strided_slice %16 {offsets = [0, 0, 0], sizes = [1, 8, 32], strides = [1, 1, 1]} : vector<4x8x32xf32> to vector<1x8x32xf32>
    %18 = vector.shape_cast %17 : vector<1x8x32xf32> to vector<8x32xf32>
    %c0_i32_8 = arith.constant 0 : i32
    %19 = vector.broadcast %c0_i32_8 : i32 to vector<8x32xi32>
    %20 = arith.cmpi eq, %6, %19 : vector<8x32xi32>
    %21 = arith.extui %20 : vector<8x32xi1> to vector<8x32xi32>
    %22 = arith.sitofp %21 : vector<8x32xi32> to vector<8x32xf32>
    %c0_9 = arith.constant 0 : index
    %c0_10 = arith.constant 0 : index
    %c0_11 = arith.constant 0 : index
    %c0_12 = arith.constant 0 : index
    %23 = vector.load %arg4[%c0_9, %c0_10, %c0_11, %c0_12] : memref<1x4x1x1xf32, #tpu.memory_space<vmem>>, vector<1x1x1x1xf32>
    %24 = vector.shape_cast %23 : vector<1x1x1x1xf32> to vector<1x1xf32>
    %cst_13 = arith.constant 0.000000e+00 : f32
    %25 = vector.broadcast %cst_13 : f32 to vector<8x32xf32>
    %26 = arith.select %20, %18, %25 : vector<8x32xi1>, vector<8x32xf32>
    %cst_14 = arith.constant dense<0.000000e+00> : vector<8xf32>
    %27 = vector.multi_reduction <add>, %26, %cst_14 [1] : vector<8x32xf32> to vector<8xf32>
    %28 = vector.shape_cast %27 : vector<8xf32> to vector<8x1xf32>
    %cst_15 = arith.constant dense<0.000000e+00> : vector<1xf32>
    %29 = vector.multi_reduction <add>, %28, %cst_15 [0] : vector<8x1xf32> to vector<1xf32>
    %30 = vector.shape_cast %29 : vector<1xf32> to vector<1x1xf32>
    %31 = arith.addf %24, %30 : vector<1x1xf32>
    %c0_16 = arith.constant 0 : index
    %c0_17 = arith.constant 0 : index
    %c0_18 = arith.constant 0 : index
    %c0_19 = arith.constant 0 : index
    %32 = vector.load %arg4[%c0_16, %c0_17, %c0_18, %c0_19] : memref<1x4x1x1xf32, #tpu.memory_space<vmem>>, vector<1x1x1x1xf32>
    %33 = vector.shape_cast %32 : vector<1x1x1x1xf32> to vector<1x1xf32>
    %34 = vector.shape_cast %31 : vector<1x1xf32> to vector<1x1x1x1xf32>
    tpu.vector_store %arg4[%c0_16, %c0_17, %c0_18, %c0_19], %34 {strides = array<i32>} : memref<1x4x1x1xf32, #tpu.memory_space<vmem>>, vector<1x1x1x1xf32>,
    %c0_20 = arith.constant 0 : index
    %c0_21 = arith.constant 0 : index
    %c0_22 = arith.constant 0 : index
    %c0_23 = arith.constant 0 : index
    %35 = vector.load %arg5[%c0_20, %c0_21, %c0_22, %c0_23] : memref<1x4x1x1xf32, #tpu.memory_space<vmem>>, vector<1x1x1x1xf32>
    %36 = vector.shape_cast %35 : vector<1x1x1x1xf32> to vector<1x1xf32>
    %37 = arith.addf %18, %22 : vector<8x32xf32>
    %cst_24 = arith.constant dense<0.000000e+00> : vector<8xf32>
    %38 = vector.multi_reduction <add>, %37, %cst_24 [1] : vector<8x32xf32> to vector<8xf32>
    %39 = vector.shape_cast %38 : vector<8xf32> to vector<8x1xf32>
    %cst_25 = arith.constant dense<0.000000e+00> : vector<1xf32>
    %40 = vector.multi_reduction <add>, %39, %cst_25 [0] : vector<8x1xf32> to vector<1xf32>
    %41 = vector.shape_cast %40 : vector<1xf32> to vector<1x1xf32>
    %42 = arith.addf %36, %41 : vector<1x1xf32>
    %c0_26 = arith.constant 0 : index
    %c0_27 = arith.constant 0 : index
    %c0_28 = arith.constant 0 : index
    %c0_29 = arith.constant 0 : index
    %43 = vector.load %arg5[%c0_26, %c0_27, %c0_28, %c0_29] : memref<1x4x1x1xf32, #tpu.memory_space<vmem>>, vector<1x1x1x1xf32>
    %44 = vector.shape_cast %43 : vector<1x1x1x1xf32> to vector<1x1xf32>
    %45 = vector.shape_cast %42 : vector<1x1xf32> to vector<1x1x1x1xf32>
    tpu.vector_store %arg5[%c0_26, %c0_27, %c0_28, %c0_29], %45 {strides = array<i32>} : memref<1x4x1x1xf32, #tpu.memory_space<vmem>>, vector<1x1x1x1xf32>,
    %46 = vector.extract_strided_slice %16 {offsets = [1, 0, 0], sizes = [1, 8, 32], strides = [1, 1, 1]} : vector<4x8x32xf32> to vector<1x8x32xf32>
    %47 = vector.shape_cast %46 : vector<1x8x32xf32> to vector<8x32xf32>
    %c1_i32 = arith.constant 1 : i32
    %48 = vector.broadcast %c1_i32 : i32 to vector<8x32xi32>
    %49 = arith.cmpi eq, %6, %48 : vector<8x32xi32>
    %50 = arith.extui %49 : vector<8x32xi1> to vector<8x32xi32>
    %51 = arith.sitofp %50 : vector<8x32xi32> to vector<8x32xf32>
    %c0_30 = arith.constant 0 : index
    %c1 = arith.constant 1 : index
    %c0_31 = arith.constant 0 : index
    %c0_32 = arith.constant 0 : index
    %52 = vector.load %arg4[%c0_30, %c1, %c0_31, %c0_32] : memref<1x4x1x1xf32, #tpu.memory_space<vmem>>, vector<1x1x1x1xf32>
    %53 = vector.shape_cast %52 : vector<1x1x1x1xf32> to vector<1x1xf32>
    %cst_33 = arith.constant 0.000000e+00 : f32
    %54 = vector.broadcast %cst_33 : f32 to vector<8x32xf32>
    %55 = arith.select %49, %47, %54 : vector<8x32xi1>, vector<8x32xf32>
    %cst_34 = arith.constant dense<0.000000e+00> : vector<8xf32>
    %56 = vector.multi_reduction <add>, %55, %cst_34 [1] : vector<8x32xf32> to vector<8xf32>
    %57 = vector.shape_cast %56 : vector<8xf32> to vector<8x1xf32>
    %cst_35 = arith.constant dense<0.000000e+00> : vector<1xf32>
    %58 = vector.multi_reduction <add>, %57, %cst_35 [0] : vector<8x1xf32> to vector<1xf32>
    %59 = vector.shape_cast %58 : vector<1xf32> to vector<1x1xf32>
    %60 = arith.addf %53, %59 : vector<1x1xf32>
    %c0_36 = arith.constant 0 : index
    %c1_37 = arith.constant 1 : index
    %c0_38 = arith.constant 0 : index
    %c0_39 = arith.constant 0 : index
    %61 = vector.load %arg4[%c0_36, %c1_37, %c0_38, %c0_39] : memref<1x4x1x1xf32, #tpu.memory_space<vmem>>, vector<1x1x1x1xf32>
    %62 = vector.shape_cast %61 : vector<1x1x1x1xf32> to vector<1x1xf32>
    %63 = vector.shape_cast %60 : vector<1x1xf32> to vector<1x1x1x1xf32>
    tpu.vector_store %arg4[%c0_36, %c1_37, %c0_38, %c0_39], %63 {strides = array<i32>} : memref<1x4x1x1xf32, #tpu.memory_space<vmem>>, vector<1x1x1x1xf32>,
    %c0_40 = arith.constant 0 : index
    %c1_41 = arith.constant 1 : index
    %c0_42 = arith.constant 0 : index
    %c0_43 = arith.constant 0 : index
    %64 = vector.load %arg5[%c0_40, %c1_41, %c0_42, %c0_43] : memref<1x4x1x1xf32, #tpu.memory_space<vmem>>, vector<1x1x1x1xf32>
    %65 = vector.shape_cast %64 : vector<1x1x1x1xf32> to vector<1x1xf32>
    %66 = arith.addf %47, %51 : vector<8x32xf32>
    %cst_44 = arith.constant dense<0.000000e+00> : vector<8xf32>
    %67 = vector.multi_reduction <add>, %66, %cst_44 [1] : vector<8x32xf32> to vector<8xf32>
    %68 = vector.shape_cast %67 : vector<8xf32> to vector<8x1xf32>
    %cst_45 = arith.constant dense<0.000000e+00> : vector<1xf32>
    %69 = vector.multi_reduction <add>, %68, %cst_45 [0] : vector<8x1xf32> to vector<1xf32>
    %70 = vector.shape_cast %69 : vector<1xf32> to vector<1x1xf32>
    %71 = arith.addf %65, %70 : vector<1x1xf32>
    %c0_46 = arith.constant 0 : index
    %c1_47 = arith.constant 1 : index
    %c0_48 = arith.constant 0 : index
    %c0_49 = arith.constant 0 : index
    %72 = vector.load %arg5[%c0_46, %c1_47, %c0_48, %c0_49] : memref<1x4x1x1xf32, #tpu.memory_space<vmem>>, vector<1x1x1x1xf32>
    %73 = vector.shape_cast %72 : vector<1x1x1x1xf32> to vector<1x1xf32>
    %74 = vector.shape_cast %71 : vector<1x1xf32> to vector<1x1x1x1xf32>
    tpu.vector_store %arg5[%c0_46, %c1_47, %c0_48, %c0_49], %74 {strides = array<i32>} : memref<1x4x1x1xf32, #tpu.memory_space<vmem>>, vector<1x1x1x1xf32>,
    %75 = vector.extract_strided_slice %16 {offsets = [2, 0, 0], sizes = [1, 8, 32], strides = [1, 1, 1]} : vector<4x8x32xf32> to vector<1x8x32xf32>
    %76 = vector.shape_cast %75 : vector<1x8x32xf32> to vector<8x32xf32>
    %c2_i32 = arith.constant 2 : i32
    %77 = vector.broadcast %c2_i32 : i32 to vector<8x32xi32>
    %78 = arith.cmpi eq, %6, %77 : vector<8x32xi32>
    %79 = arith.extui %78 : vector<8x32xi1> to vector<8x32xi32>
    %80 = arith.sitofp %79 : vector<8x32xi32> to vector<8x32xf32>
    %c0_50 = arith.constant 0 : index
    %c2 = arith.constant 2 : index
    %c0_51 = arith.constant 0 : index
    %c0_52 = arith.constant 0 : index
    %81 = vector.load %arg4[%c0_50, %c2, %c0_51, %c0_52] : memref<1x4x1x1xf32, #tpu.memory_space<vmem>>, vector<1x1x1x1xf32>
    %82 = vector.shape_cast %81 : vector<1x1x1x1xf32> to vector<1x1xf32>
    %cst_53 = arith.constant 0.000000e+00 : f32
    %83 = vector.broadcast %cst_53 : f32 to vector<8x32xf32>
    %84 = arith.select %78, %76, %83 : vector<8x32xi1>, vector<8x32xf32>
    %cst_54 = arith.constant dense<0.000000e+00> : vector<8xf32>
    %85 = vector.multi_reduction <add>, %84, %cst_54 [1] : vector<8x32xf32> to vector<8xf32>
    %86 = vector.shape_cast %85 : vector<8xf32> to vector<8x1xf32>
    %cst_55 = arith.constant dense<0.000000e+00> : vector<1xf32>
    %87 = vector.multi_reduction <add>, %86, %cst_55 [0] : vector<8x1xf32> to vector<1xf32>
    %88 = vector.shape_cast %87 : vector<1xf32> to vector<1x1xf32>
    %89 = arith.addf %82, %88 : vector<1x1xf32>
    %c0_56 = arith.constant 0 : index
    %c2_57 = arith.constant 2 : index
    %c0_58 = arith.constant 0 : index
    %c0_59 = arith.constant 0 : index
    %90 = vector.load %arg4[%c0_56, %c2_57, %c0_58, %c0_59] : memref<1x4x1x1xf32, #tpu.memory_space<vmem>>, vector<1x1x1x1xf32>
    %91 = vector.shape_cast %90 : vector<1x1x1x1xf32> to vector<1x1xf32>
    %92 = vector.shape_cast %89 : vector<1x1xf32> to vector<1x1x1x1xf32>
    tpu.vector_store %arg4[%c0_56, %c2_57, %c0_58, %c0_59], %92 {strides = array<i32>} : memref<1x4x1x1xf32, #tpu.memory_space<vmem>>, vector<1x1x1x1xf32>,
    %c0_60 = arith.constant 0 : index
    %c2_61 = arith.constant 2 : index
    %c0_62 = arith.constant 0 : index
    %c0_63 = arith.constant 0 : index
    %93 = vector.load %arg5[%c0_60, %c2_61, %c0_62, %c0_63] : memref<1x4x1x1xf32, #tpu.memory_space<vmem>>, vector<1x1x1x1xf32>
    %94 = vector.shape_cast %93 : vector<1x1x1x1xf32> to vector<1x1xf32>
    %95 = arith.addf %76, %80 : vector<8x32xf32>
    %cst_64 = arith.constant dense<0.000000e+00> : vector<8xf32>
    %96 = vector.multi_reduction <add>, %95, %cst_64 [1] : vector<8x32xf32> to vector<8xf32>
    %97 = vector.shape_cast %96 : vector<8xf32> to vector<8x1xf32>
    %cst_65 = arith.constant dense<0.000000e+00> : vector<1xf32>
    %98 = vector.multi_reduction <add>, %97, %cst_65 [0] : vector<8x1xf32> to vector<1xf32>
    %99 = vector.shape_cast %98 : vector<1xf32> to vector<1x1xf32>
    %100 = arith.addf %94, %99 : vector<1x1xf32>
    %c0_66 = arith.constant 0 : index
    %c2_67 = arith.constant 2 : index
    %c0_68 = arith.constant 0 : index
    %c0_69 = arith.constant 0 : index
    %101 = vector.load %arg5[%c0_66, %c2_67, %c0_68, %c0_69] : memref<1x4x1x1xf32, #tpu.memory_space<vmem>>, vector<1x1x1x1xf32>
    %102 = vector.shape_cast %101 : vector<1x1x1x1xf32> to vector<1x1xf32>
    %103 = vector.shape_cast %100 : vector<1x1xf32> to vector<1x1x1x1xf32>
    tpu.vector_store %arg5[%c0_66, %c2_67, %c0_68, %c0_69], %103 {strides = array<i32>} : memref<1x4x1x1xf32, #tpu.memory_space<vmem>>, vector<1x1x1x1xf32>,
    %104 = vector.extract_strided_slice %16 {offsets = [3, 0, 0], sizes = [1, 8, 32], strides = [1, 1, 1]} : vector<4x8x32xf32> to vector<1x8x32xf32>
    %105 = vector.shape_cast %104 : vector<1x8x32xf32> to vector<8x32xf32>
    %c3_i32 = arith.constant 3 : i32
    %106 = vector.broadcast %c3_i32 : i32 to vector<8x32xi32>
    %107 = arith.cmpi eq, %6, %106 : vector<8x32xi32>
    %108 = arith.extui %107 : vector<8x32xi1> to vector<8x32xi32>
    %109 = arith.sitofp %108 : vector<8x32xi32> to vector<8x32xf32>
    %c0_70 = arith.constant 0 : index
    %c3 = arith.constant 3 : index
    %c0_71 = arith.constant 0 : index
    %c0_72 = arith.constant 0 : index
    %110 = vector.load %arg4[%c0_70, %c3, %c0_71, %c0_72] : memref<1x4x1x1xf32, #tpu.memory_space<vmem>>, vector<1x1x1x1xf32>
    %111 = vector.shape_cast %110 : vector<1x1x1x1xf32> to vector<1x1xf32>
    %cst_73 = arith.constant 0.000000e+00 : f32
    %112 = vector.broadcast %cst_73 : f32 to vector<8x32xf32>
    %113 = arith.select %107, %105, %112 : vector<8x32xi1>, vector<8x32xf32>
    %cst_74 = arith.constant dense<0.000000e+00> : vector<8xf32>
    %114 = vector.multi_reduction <add>, %113, %cst_74 [1] : vector<8x32xf32> to vector<8xf32>
    %115 = vector.shape_cast %114 : vector<8xf32> to vector<8x1xf32>
    %cst_75 = arith.constant dense<0.000000e+00> : vector<1xf32>
    %116 = vector.multi_reduction <add>, %115, %cst_75 [0] : vector<8x1xf32> to vector<1xf32>
    %117 = vector.shape_cast %116 : vector<1xf32> to vector<1x1xf32>
    %118 = arith.addf %111, %117 : vector<1x1xf32>
    %c0_76 = arith.constant 0 : index
    %c3_77 = arith.constant 3 : index
    %c0_78 = arith.constant 0 : index
    %c0_79 = arith.constant 0 : index
    %119 = vector.load %arg4[%c0_76, %c3_77, %c0_78, %c0_79] : memref<1x4x1x1xf32, #tpu.memory_space<vmem>>, vector<1x1x1x1xf32>
    %120 = vector.shape_cast %119 : vector<1x1x1x1xf32> to vector<1x1xf32>
    %121 = vector.shape_cast %118 : vector<1x1xf32> to vector<1x1x1x1xf32>
    tpu.vector_store %arg4[%c0_76, %c3_77, %c0_78, %c0_79], %121 {strides = array<i32>} : memref<1x4x1x1xf32, #tpu.memory_space<vmem>>, vector<1x1x1x1xf32>,
    %c0_80 = arith.constant 0 : index
    %c3_81 = arith.constant 3 : index
    %c0_82 = arith.constant 0 : index
    %c0_83 = arith.constant 0 : index
    %122 = vector.load %arg5[%c0_80, %c3_81, %c0_82, %c0_83] : memref<1x4x1x1xf32, #tpu.memory_space<vmem>>, vector<1x1x1x1xf32>
    %123 = vector.shape_cast %122 : vector<1x1x1x1xf32> to vector<1x1xf32>
    %124 = arith.addf %105, %109 : vector<8x32xf32>
    %cst_84 = arith.constant dense<0.000000e+00> : vector<8xf32>
    %125 = vector.multi_reduction <add>, %124, %cst_84 [1] : vector<8x32xf32> to vector<8xf32>
    %126 = vector.shape_cast %125 : vector<8xf32> to vector<8x1xf32>
    %cst_85 = arith.constant dense<0.000000e+00> : vector<1xf32>
    %127 = vector.multi_reduction <add>, %126, %cst_85 [0] : vector<8x1xf32> to vector<1xf32>
    %128 = vector.shape_cast %127 : vector<1xf32> to vector<1x1xf32>
    %129 = arith.addf %123, %128 : vector<1x1xf32>
    %c0_86 = arith.constant 0 : index
    %c3_87 = arith.constant 3 : index
    %c0_88 = arith.constant 0 : index
    %c0_89 = arith.constant 0 : index
    %130 = vector.load %arg5[%c0_86, %c3_87, %c0_88, %c0_89] : memref<1x4x1x1xf32, #tpu.memory_space<vmem>>, vector<1x1x1x1xf32>
    %131 = vector.shape_cast %130 : vector<1x1x1x1xf32> to vector<1x1xf32>
    %132 = vector.shape_cast %129 : vector<1x1xf32> to vector<1x1x1x1xf32>
    tpu.vector_store %arg5[%c0_86, %c3_87, %c0_88, %c0_89], %132 {strides = array<i32>} : memref<1x4x1x1xf32, #tpu.memory_space<vmem>>, vector<1x1x1x1xf32>,
    return
  }
  func.func @transform_0(%arg0: i32, %arg1: i32) -> (i32, i32, i32, i32) {
    %c0_i32 = arith.constant 0 : i32
    %c0_i32_0 = arith.constant 0 : i32
    %c0_i32_1 = arith.constant 0 : i32
    return %arg0, %c0_i32, %c0_i32_0, %arg1 : i32, i32, i32, i32
  }
  func.func @transform_1(%arg0: i32, %arg1: i32) -> (i32, i32, i32) {
    %c0_i32 = arith.constant 0 : i32
    %c0_i32_0 = arith.constant 0 : i32
    return %arg0, %c0_i32, %arg1 : i32, i32, i32
  }
  func.func @transform_2(%arg0: i32, %arg1: i32) -> (i32, i32, i32, i32) {
    %c0_i32 = arith.constant 0 : i32
    %c0_i32_0 = arith.constant 0 : i32
    %c0_i32_1 = arith.constant 0 : i32
    %c0_i32_2 = arith.constant 0 : i32
    return %arg0, %c0_i32, %c0_i32_0, %c0_i32_1 : i32, i32, i32, i32
  }
  func.func @transform_3(%arg0: i32, %arg1: i32) -> (i32, i32, i32, i32) {
    %c0_i32 = arith.constant 0 : i32
    %c0_i32_0 = arith.constant 0 : i32
    %c0_i32_1 = arith.constant 0 : i32
    %c0_i32_2 = arith.constant 0 : i32
    return %arg0, %c0_i32, %c0_i32_0, %c0_i32_1 : i32, i32, i32, i32
  }
}

</mosaic_0001>

<bundles_post_ra>
// kernel: simple_dice_loss.1
= control target key start
LH: loop header
LB: loop body
LE: loop exit
PB: predicated region body
PF: predicated region fallthrough
CT: control target
= control target key end

     0   :  { %s639_s12 = smov 0   ;;  %s641_s13 = smov 0   ;;  %s743_s0 = inlined_call_operand.vmem [shape: f32[2,4,8,32], index: 0, kind: input, shape index: {}]   ;;  %s744_s1 = inlined_call_operand.vmem [shape: s32[2,8,32], index: 1, kind: input, shape index: {}]   ;;  %s745_s2 = inlined_call_operand.vmem [shape: f32[2,4,1,1], index: 2, kind: output, shape index: {0}]   ;;  %s746_s3 = inlined_call_operand.vmem [shape: f32[2,4,1,1], index: 3, kind: output, shape index: {1}]  }
   0x1   :  { %s643_s14 = smov 0  }
   0x2 LB: > { %s26_s15 = sadd.s32 1, %s612_s13  ;;  %p534_p0 = scmp.ge.s32.totalorder %s616_s14, 1  ;;  %s616_s14 = sphi %s643_s14, %s14_s14   ;;  %s612_s13 = sphi %s641_s13, %s748_s13   ;;  %s608_s12 = sphi %s639_s12, %s747_s12  }
   0x3   : > { %p28_p1 = scmp.ge.s32.totalorder %s26_s15, 2  ;;  %p171_p2 = scmp.lt.s32.totalorder %s616_s14, 3 }
   0x5   : > { %s750_s15 = smov (%p28_p1, %s26_s15), 0  ;;  %p172_p3 = pnand %p534_p0, %p171_p2 }
   0x6   : > { %p208_p4 = scmp.lt.s32.totalorder (!%p172_p3), %s608_s12, 1 }
   0x7   : > { %175 = sbr.rel (%p172_p3) target bundleno = 210 (0xd2), region = 28 }
   0xc   : > { %s752_s12 = smov (!%p208_p4, %s608_s12), 1  ;;  %vm249_vm0 = vcmask 261120   ;;  %vm235_vm1 = vcmask 0   ;;  %v618_v31 = vmov 0.0  }
   0xd   : > { %s558_s16 = sshll.u32 %s752_s12, 5  ;;  %s538_s20 = sshll.u32 %s752_s12, 2 }
   0xe   : > { %s215_s19 = scalar_lea.vmem %s743_s0, %s558_s16  ;;  %s675_s23 = scalar_lea.vmem %s745_s2, %s538_s20 }
   0xf   : > { %v244_v0 = vld [vmem:[%s215_s19] sm:$0xff]  ;;  %v245_v1 = vld [vmem:[%s215_s19 + $0x8] sm:$0xff]  ;;  %v246_v2 = vld [vmem:[%s215_s19 + $0x10] sm:$0xff]  ;;  %237 = vst.msk [vmem:[%s675_s23 + $0x1] sm:$0x1] %vm235_vm1, %v618_v31  ;;  %s537_s24 = sshll.u32 %s752_s12, 3  ;;  %s683_s27 = scalar_lea.vmem %s746_s3, %s538_s20 }
  0x10   : > { %v247_v3 = vld [vmem:[%s215_s19 + $0x18] sm:$0xff]  ;;  %v250_v4 = vsel %vm249_vm0, %v244_v0, -inf  ;;  %v251_v5 = vsel %vm249_vm0, %v245_v1, -inf  ;;  %v252_v6 = vsel %vm249_vm0, %v246_v2, -inf  ;;  %236 = vst.msk [vmem:[%s675_s23] sm:$0x1] %vm235_vm1, %v618_v31  ;;  %s222_s30 = scalar_lea.vmem %s744_s1, %s537_s24 }
  0x11   : > { %v253_v7 = vsel %vm249_vm0, %v247_v3, -inf  ;;  %v254_v8 = vmax.f32 %v250_v4, %v251_v5  ;;  %238 = vst.msk [vmem:[%s675_s23 + $0x2] sm:$0x1] %vm235_vm1, %v618_v31  ;;  %v248_v38 = vld [vmem:[%s222_s30] sm:$0xff] }
  0x12   : > { %v255_v9 = vmax.f32 %v252_v6, %v253_v7  ;;  %239 = vst.msk [vmem:[%s675_s23 + $0x3] sm:$0x1] %vm235_vm1, %v618_v31  ;;  %vm324_vm6 = vcmp.eq.s32.totalorder %v248_v38, 1  ;;  %vm294_vm7 = vcmp.eq.s32.totalorder %v248_v38, 0  ;;  %vm355_vm8 = vcmp.eq.s32.totalorder %v248_v38, 2 }
  0x13   : > { %240 = vst.msk [vmem:[%s683_s27] sm:$0x1] %vm235_vm1, %v618_v31  ;;  %v541_v45 = vsel %vm324_vm6, 1.0, %v618_v31  ;;  %v540_v47 = vsel %vm294_vm7, 1.0, %v618_v31  ;;  %v546_v52 = vsel %vm355_vm8, 1.0, %v618_v31  ;;  %vm386_vm9 = vcmp.eq.s32.totalorder %v248_v38, 3 }
  0x14   : > { %v256_v10 = vmax.f32 %v254_v8, %v255_v9  ;;  %241 = vst.msk [vmem:[%s683_s27 + $0x1] sm:$0x1] %vm235_vm1, %v618_v31  ;;  %v551_v61 = vsel %vm386_vm9, 1.0, %v618_v31 }
  0x15   : > { %242 = vst.msk [vmem:[%s683_s27 + $0x2] sm:$0x1] %vm235_vm1, %v618_v31 }
  0x16   : > { %v257_v11 = vsub.f32 %v244_v0, %v256_v10  ;;  %v258_v12 = vsub.f32 %v245_v1, %v256_v10  ;;  %v259_v13 = vsub.f32 %v246_v2, %v256_v10  ;;  %v260_v14 = vsub.f32 %v247_v3, %v256_v10  ;;  %243 = vst.msk [vmem:[%s683_s27 + $0x3] sm:$0x1] %vm235_vm1, %v618_v31 }
  0x18   : > { %v261_v15 = vmul.f32 1.442695, %v257_v11  ;;  %v263_v16 = vmul.f32 1.442695, %v258_v12  ;;  %v265_v17 = vmul.f32 1.442695, %v259_v13 }
  0x19   : > { %v267_v18 = vmul.f32 1.442695, %v260_v14 }
  0x1a   : > { %584 = vpow2.f32 %v261_v15 }
  0x1b   : > { %586 = vpow2.f32 %v263_v16 }
  0x1c   : > { %588 = vpow2.f32 %v265_v17 }
  0x1d   : > { %590 = vpow2.f32 %v267_v18 }
  0x20   : > { %v585_v19 = vpop.eup %584 }
  0x21   : > { %v587_v20 = vpop.eup %586  ;;  %v269_v21 = vsel %vm249_vm0, %v585_v19, 0.0 }
  0x22   : > { %v589_v22 = vpop.eup %588  ;;  %v270_v23 = vsel %vm249_vm0, %v587_v20, 0.0 }
  0x23   : > { %v591_v24 = vpop.eup %590  ;;  %v271_v25 = vadd.f32 %v270_v23, %v269_v21  ;;  %v272_v26 = vsel %vm249_vm0, %v589_v22, 0.0 }
  0x24   : > { %v274_v27 = vsel %vm249_vm0, %v591_v24, 0.0 }
  0x25   : > { %v273_v28 = vadd.f32 %v272_v26, %v271_v25  ;;  %v297_v25 = vld [vmem:[%s675_s23] sm:$0x1] }
  0x27   : > { %v275_v29 = vadd.f32 %v274_v27, %v273_v28 }
  0x29   : > { %592 = vrcp.f32 %v275_v29  ;;  %v287_v33 = vand.u32 2147483648, %v275_v29  ;;  %vm281_vm2 = vweird.f32 %v275_v29  ;;  %v285_v35 = vand.u32 2147483647, %v275_v29 }
  0x2b   : > { %v288_v37 = vor.u32 1.1754944e-38, %v287_v33  ;;  %vm286_vm5 = vcmp.eq.f32.partialorder %v285_v35, 8.507059e+37 }
  0x2f   : > { %v593_v30 = vpop.eup %592 }
  0x30   : > { %v277_v32 = vmul.f32 %v593_v30, %v275_v29  ;;  %vm282_vm3 = vweird.f32 %v593_v30 }
  0x31   : > { %vm283_vm4 = vmor %vm281_vm2, %vm282_vm3 }
  0x32   : > { %v278_v34 = vsub.f32 1.0, %v277_v32 }
  0x34   : > { %v279_v36 = vmul.f32 %v593_v30, %v278_v34 }
  0x36   : > { %v280_v39 = vadd.f32 %v593_v30, %v279_v36 }
  0x38   : > { %v284_v40 = vsel %vm283_vm4, %v593_v30, %v280_v39  ;;  %v547_v30 = vld [vmem:[%s675_s23 + $0x2] sm:$0x1] }
  0x39   : > { %v289_v41 = vsel %vm286_vm5, %v288_v37, %v284_v40 }
  0x3a   : > { %v291_v42 = vmul.f32 %v587_v20, %v289_v41  ;;  %v290_v43 = vmul.f32 %v585_v19, %v289_v41  ;;  %v292_v44 = vmul.f32 %v589_v22, %v289_v41  ;;  %v293_v59 = vmul.f32 %v591_v24, %v289_v41  ;;  %v542_v24 = vld [vmem:[%s675_s23 + $0x1] sm:$0x1] }
  0x3c   : > { %v329_v46 = vsel %vm324_vm6, %v291_v42, 0.0  ;;  %v298_v48 = vsel %vm294_vm7, %v290_v43, 0.0  ;;  %v360_v49 = vsel %vm355_vm8, %v292_v44, 0.0  ;;  %v343_v54 = vadd.f32 %v541_v45, %v291_v42 }
  0x3d   : > { %v330_v50 = vsel %vm249_vm0, %v329_v46, 0.0  ;;  %v299_v51 = vsel %vm249_vm0, %v298_v48, 0.0  ;;  %v361_v53 = vsel %vm249_vm0, %v360_v49, 0.0  ;;  %v312_v55 = vadd.f32 %v540_v47, %v290_v43 }
  0x3e   : > { %331 = vadd.xlane.f32.xlu1 %v330_v50  ;;  %300 = vadd.xlane.f32.xlu0 %v299_v51  ;;  %v374_v56 = vadd.f32 %v546_v52, %v292_v44  ;;  %v344_v57 = vsel %vm249_vm0, %v343_v54, 0.0  ;;  %v405_v62 = vadd.f32 %v551_v61, %v293_v59  ;;  %v391_v63 = vsel %vm386_vm9, %v293_v59, 0.0  ;;  %v544_v50 = vld [vmem:[%s683_s27 + $0x1] sm:$0x1]  ;;  %v311_v51 = vld [vmem:[%s683_s27] sm:$0x1] }
  0x3f   : > { %362 = vadd.xlane.f32.xlu2 %v361_v53  ;;  %v313_v58 = vsel %vm249_vm0, %v312_v55, 0.0  ;;  %v392_v1 = vsel %vm249_vm0, %v391_v63, 0.0  ;;  %v549_v55 = vld [vmem:[%s683_s27 + $0x2] sm:$0x1] }
  0x40   : > { %v375_v60 = vsel %vm249_vm0, %v374_v56, 0.0  ;;  %v406_v0 = vsel %vm249_vm0, %v405_v62, 0.0 }
  0x46   : > { %345 = vadd.xlane.f32.xlu1 %v344_v57  ;;  %314 = vadd.xlane.f32.xlu0 %v313_v58 }
  0x47   : > { %376 = vadd.xlane.f32.xlu2 %v375_v60 }
  0x4e   : > { %407 = vadd.xlane.f32.xlu1 %v406_v0  ;;  %393 = vadd.xlane.f32.xlu0 %v392_v1 }
  0xb1   : > { %v332_v2 = vpop.xlane.xlu1 %331  ;;  %v301_v3 = vpop.xlane.xlu0 %300 }
  0xb2   : > { %v333_v4 = vrot.slane %v332_v2, 4  ;;  %v302_v5 = vrot.slane %v301_v3, 4  ;;  %v363_v6 = vpop.xlane.xlu2 %362 }
  0xb3   : > { %v364_v7 = vrot.slane %v363_v6, 4 }
  0xb4   : > { %v334_v8 = vadd.f32 %v333_v4, %v332_v2  ;;  %v303_v9 = vadd.f32 %v302_v5, %v301_v3  ;;  %v554_v4 = vld [vmem:[%s683_s27 + $0x3] sm:$0x1] }
  0xb5   : > { %v365_v10 = vadd.f32 %v364_v7, %v363_v6  ;;  %v552_v5 = vld [vmem:[%s675_s23 + $0x3] sm:$0x1] }
  0xb6   : > { %v335_v11 = vrot.slane %v334_v8, 2  ;;  %v304_v12 = vrot.slane %v303_v9, 2 }
  0xb7   : > { %v366_v13 = vrot.slane %v365_v10, 2 }
  0xb8   : > { %v336_v14 = vadd.f32 %v335_v11, %v334_v8  ;;  %v305_v15 = vadd.f32 %v304_v12, %v303_v9 }
  0xb9   : > { %v367_v16 = vadd.f32 %v366_v13, %v365_v10  ;;  %v346_v17 = vpop.xlane.xlu1 %345  ;;  %v315_v18 = vpop.xlane.xlu0 %314 }
  0xba   : > { %v337_v19 = vrot.slane %v336_v14, 1  ;;  %v306_v20 = vrot.slane %v305_v15, 1  ;;  %v347_v21 = vrot.slane %v346_v17, 4  ;;  %v316_v22 = vrot.slane %v315_v18, 4  ;;  %v377_v23 = vpop.xlane.xlu2 %376 }
  0xbb   : > { %v368_v26 = vrot.slane %v367_v16, 1  ;;  %v378_v27 = vrot.slane %v377_v23, 4 }
  0xbc   : > { %v338_v28 = vadd.f32 %v337_v19, %v336_v14  ;;  %v307_v29 = vadd.f32 %v306_v20, %v305_v15  ;;  %v348_v31 = vadd.f32 %v347_v21, %v346_v17  ;;  %v317_v32 = vadd.f32 %v316_v22, %v315_v18 }
  0xbd   : > { %v369_v33 = vadd.f32 %v368_v26, %v367_v16  ;;  %v379_v34 = vadd.f32 %v378_v27, %v377_v23 }
  0xbe   : > { %v339_v35 = vadd.f32 %v542_v24, %v338_v28  ;;  %v308_v36 = vadd.f32 %v307_v29, %v297_v25  ;;  %v349_v37 = vrot.slane %v348_v31, 2  ;;  %v318_v38 = vrot.slane %v317_v32, 2 }
  0xbf   : > { %v370_v39 = vadd.f32 %v547_v30, %v369_v33  ;;  %v380_v40 = vrot.slane %v379_v34, 2 }
  0xc0   : > { %543 = vst.msk [vmem:[%s675_s23 + $0x1] sm:$0x1] %vm235_vm1, %v339_v35  ;;  %v350_v41 = vadd.f32 %v349_v37, %v348_v31  ;;  %v319_v42 = vadd.f32 %v318_v38, %v317_v32 }
  0xc1   : > { %310 = vst.msk [vmem:[%s675_s23] sm:$0x1] %vm235_vm1, %v308_v36  ;;  %v381_v43 = vadd.f32 %v380_v40, %v379_v34  ;;  %v408_v44 = vpop.xlane.xlu1 %407  ;;  %v394_v45 = vpop.xlane.xlu0 %393 }
  0xc2   : > { %548 = vst.msk [vmem:[%s675_s23 + $0x2] sm:$0x1] %vm235_vm1, %v370_v39  ;;  %v351_v46 = vrot.slane %v350_v41, 1  ;;  %v320_v47 = vrot.slane %v319_v42, 1  ;;  %v409_v48 = vrot.slane %v408_v44, 4  ;;  %v395_v49 = vrot.slane %v394_v45, 4 }
  0xc3   : > { %v382_v52 = vrot.slane %v381_v43, 1 }
  0xc4   : > { %v352_v53 = vadd.f32 %v351_v46, %v350_v41  ;;  %v321_v54 = vadd.f32 %v320_v47, %v319_v42  ;;  %v410_v56 = vadd.f32 %v409_v48, %v408_v44  ;;  %v396_v57 = vadd.f32 %v395_v49, %v394_v45 }
  0xc5   : > { %v383_v58 = vadd.f32 %v382_v52, %v381_v43 }
  0xc6   : > { %v353_v59 = vadd.f32 %v544_v50, %v352_v53  ;;  %v322_v60 = vadd.f32 %v321_v54, %v311_v51  ;;  %v411_v61 = vrot.slane %v410_v56, 2  ;;  %v397_v62 = vrot.slane %v396_v57, 2 }
  0xc7   : > { %v384_v63 = vadd.f32 %v549_v55, %v383_v58 }
  0xc8   : > { %545 = vst.msk [vmem:[%s683_s27 + $0x1] sm:$0x1] %vm235_vm1, %v353_v59  ;;  %v412_v0 = vadd.f32 %v411_v61, %v410_v56  ;;  %v398_v1 = vadd.f32 %v397_v62, %v396_v57 }
  0xc9   : > { %323 = vst.msk [vmem:[%s683_s27] sm:$0x1] %vm235_vm1, %v322_v60 }
  0xca   : > { %550 = vst.msk [vmem:[%s683_s27 + $0x2] sm:$0x1] %vm235_vm1, %v384_v63  ;;  %v413_v2 = vrot.slane %v412_v0, 1  ;;  %v399_v3 = vrot.slane %v398_v1, 1 }
  0xcc   : > { %v414_v6 = vadd.f32 %v413_v2, %v412_v0  ;;  %v400_v7 = vadd.f32 %v399_v3, %v398_v1 }
  0xce   : > { %v415_v8 = vadd.f32 %v554_v4, %v414_v6  ;;  %v401_v9 = vadd.f32 %v552_v5, %v400_v7 }
  0xd0   : > { %555 = vst.msk [vmem:[%s683_s27 + $0x3] sm:$0x1] %vm235_vm1, %v415_v8 }
  0xd1   : > { %553 = vst.msk [vmem:[%s675_s23 + $0x3] sm:$0x1] %vm235_vm1, %v401_v9 }
  0xd2 PF: > { %s14_s14 = sadd.s32 1, %s616_s14   ;;  %s747_s12 = smov %s612_s13 }
  0xd3   : > { %p11_p5 = scmp.ge.s32.totalorder %s14_s14, 4   ;;  %s748_s13 = smov %s750_s15 }
  0xd5   :  { %13 = sbr.rel (!%p11_p5) target bundleno = 2 (0x2), region = 83 }

</bundles_post_ra>
